<compile_context>
chip_gen: v5e
topology: v5e:2x2
jax: 0.10.0
libtpu: 0.0.40
codegen_flags: <defaults>
</compile_context>

<pallas_src>
import functools

import jax
import jax.numpy as jnp
from jax.experimental import pallas as pl
from jax.experimental.pallas import tpu as pltpu


# -----------------------------------------------------------------------------
# Kernel: one fused matmul + f32 bias add, lane-dense output tile.
# -----------------------------------------------------------------------------
def map2num_kernel(map_ref, w_ref, b_ref, out_ref):
    out_ref[...] = (
        jnp.dot(map_ref[...], w_ref[...], preferred_element_type=jnp.float32)
        + b_ref[...]
    )


def _round_up(x, m):
    return ((x + m - 1) // m) * m


# -----------------------------------------------------------------------------
# Builder: map_size / output_size / tile_b / compute_dtype are STATIC (closed
# over), so the wrapper slices are static and the whole thing jits cleanly.
# -----------------------------------------------------------------------------
def make_map2num_forward(map_size, output_size, *, tile_b=512,
                         compute_dtype=jnp.bfloat16):
    mo = map_size + output_size

    def fwd(map_in, w_cat, b_cat):
        """Returns (num, map, x) exactly like Map2NumDecoder.forward."""
        batch = map_in.shape[0]

        # Batch tile: multiple of 8 sublanes, capped at tile_b (and at the
        # padded batch itself for tiny demos).
        tb = min(tile_b, _round_up(max(batch, 1), 8))
        b_pad = _round_up(batch, tb)

        x_in = map_in.astype(compute_dtype)
        if b_pad != batch:
            x_in = jnp.pad(x_in, ((0, b_pad - batch), (0, 0)))
        w = w_cat.astype(compute_dtype)
        b = b_cat.astype(jnp.float32)

        in_bytes = jnp.dtype(compute_dtype).itemsize
        cost = pl.CostEstimate(
            flops=2 * b_pad * map_size * mo,
            transcendentals=0,
            bytes_accessed=(b_pad * map_size + map_size * mo) * in_bytes
            + (mo + b_pad * mo) * 4,
        )

        out = pl.pallas_call(
            map2num_kernel,
            out_shape=jax.ShapeDtypeStruct((b_pad, mo), jnp.float32),
            grid=(b_pad // tb,),
            in_specs=[
                # activation stream: tiled & double-buffered over batch
                pl.BlockSpec((tb, map_size), lambda i: (i, 0)),
                # fused weights + bias: VMEM-resident across all grid steps
                pl.BlockSpec((map_size, mo), lambda i: (0, 0)),
                pl.BlockSpec((1, mo), lambda i: (0, 0)),
            ],
            out_specs=pl.BlockSpec((tb, mo), lambda i: (i, 0)),
            compiler_params=pltpu.CompilerParams(
                dimension_semantics=("parallel",),   # both TCs on v7x
            ),
            cost_estimate=cost,
        )(x_in, w, b)

        # Static slices (map_size is a closed-over Python int).
        x = out[:batch, :map_size]     # layer1(map)
        num = out[:batch, map_size:]   # layer2(map)
        return num, map_in, x

    return jax.jit(fwd)


# -----------------------------------------------------------------------------
# Pure-JAX reference (mirrors the PyTorch module exactly, f32 throughout).
# -----------------------------------------------------------------------------
def reference_forward(map_in, w1, b1, w2, b2):
    x = map_in @ w1 + b1
    num = map_in @ w2 + b2
    return num, map_in, x


# -----------------------------------------------------------------------------
# Deterministic parameter construction.  Weights stored as (in, out); the two
# linears are packed once here into a single (M, M+O) RHS and (1, M+O) bias.
# -----------------------------------------------------------------------------
def make_params(key, map_size, output_size):
    k1, k2, k3, k4 = jax.random.split(key, 4)
    scale = 1.0 / jnp.sqrt(jnp.float32(map_size))
    w1 = scale * jax.random.normal(k1, (map_size, map_size), dtype=jnp.float32)
    b1 = scale * jax.random.normal(k2, (map_size,), dtype=jnp.float32)
    w2 = scale * jax.random.normal(k3, (map_size, output_size), dtype=jnp.float32)
    b2 = scale * jax.random.normal(k4, (output_size,), dtype=jnp.float32)

    w_cat = jnp.concatenate([w1, w2], axis=1)            # (M, M+O)
    b_cat = jnp.concatenate([b1, b2], axis=0)[None, :]   # (1, M+O)
    return (w1, b1, w2, b2), (w_cat, b_cat)


if __name__ == "__main__":
    # Small demo shapes: M + O = 128 -> the fused output tile is exactly one
    # lane-dense 128-wide slab; batch = 8 fills one f32 sublane group.
    B, M, O = 8, 96, 32

    key = jax.random.PRNGKey(0)
    k_map, k_p = jax.random.split(key)

    map_in = jax.random.normal(k_map, (B, M), dtype=jnp.float32)
    (w1, b1, w2, b2), (w_cat, b_cat) = make_params(k_p, M, O)

    r_num, r_map, r_x = reference_forward(map_in, w1, b1, w2, b2)

    # 1) f32 path — strict check against the exact PyTorch-equivalent math.
    fwd_f32 = make_map2num_forward(M, O, compute_dtype=jnp.float32)
    num, map_out, x = fwd_f32(map_in, w_cat, b_cat)
    jax.block_until_ready((num, map_out, x))
    assert jnp.allclose(num, r_num, atol=1e-4, rtol=1e-4), "num mismatch (f32)"
    assert jnp.allclose(map_out, r_map, atol=1e-4, rtol=1e-4), "map mismatch (f32)"
    assert jnp.allclose(x, r_x, atol=1e-4, rtol=1e-4), "x mismatch (f32)"

    # 2) bf16 compute path (the perf default on v6e/v7x) — f32 accumulation,
    #    so only input-rounding error vs the f32 reference.
    fwd_bf16 = make_map2num_forward(M, O, compute_dtype=jnp.bfloat16)
    num_b, map_out_b, x_b = fwd_bf16(map_in, w_cat, b_cat)
    jax.block_until_ready((num_b, map_out_b, x_b))
    assert jnp.allclose(num_b, r_num, atol=6e-2, rtol=6e-2), "num mismatch (bf16)"
    assert jnp.allclose(map_out_b, r_map, atol=1e-6, rtol=1e-6), "map mismatch (bf16)"
    assert jnp.allclose(x_b, r_x, atol=6e-2, rtol=6e-2), "x mismatch (bf16)"

    print("KERNEL_OK")
</pallas_src>

<mosaic_0001>
module attributes {stable_mosaic.version = 11 : i64} {
  func.func @map2num_kernel(%arg0: i32, %arg1: memref<8x96xf32, #tpu.memory_space<vmem>>, %arg2: memref<96x128xf32, #tpu.memory_space<vmem>>, %arg3: memref<1x128xf32, #tpu.memory_space<vmem>>, %arg4: memref<8x128xf32, #tpu.memory_space<vmem>>) attributes {dimension_semantics = [#tpu.dimension_semantics<parallel>], iteration_bounds = array<i64: 1>, scalar_prefetch = 0 : i64, scratch_operands = 0 : i64, tpu.core_type = #tpu.core_type<tc>, window_params = [{transform_indices = @transform_0, window_bounds = array<i64: 8, 96>}, {pipeline_mode = #tpu.pipeline_mode<synchronous>, transform_indices = @transform_1, window_bounds = array<i64: 96, 128>}, {pipeline_mode = #tpu.pipeline_mode<synchronous>, transform_indices = @transform_2, window_bounds = array<i64: 1, 128>}, {transform_indices = @transform_3, window_bounds = array<i64: 8, 128>}]} {
    %c0 = arith.constant 0 : index
    %c0_0 = arith.constant 0 : index
    %0 = vector.load %arg1[%c0, %c0_0] : memref<8x96xf32, #tpu.memory_space<vmem>>, vector<8x96xf32>
    %c0_1 = arith.constant 0 : index
    %c0_2 = arith.constant 0 : index
    %1 = vector.load %arg2[%c0_1, %c0_2] : memref<96x128xf32, #tpu.memory_space<vmem>>, vector<96x128xf32>
    %cst = arith.constant dense<0.000000e+00> : vector<8x128xf32>
    %2 = tpu.matmul %0, %1, %cst {dimension_numbers = #tpu.dot_dimension_numbers<[1], [0], [0], [1], [0, 0, 1, 1], [], []>} : vector<8x96xf32>, vector<96x128xf32>, vector<8x128xf32> -> vector<8x128xf32>
    %c0_3 = arith.constant 0 : index
    %c0_4 = arith.constant 0 : index
    %3 = vector.load %arg3[%c0_3, %c0_4] : memref<1x128xf32, #tpu.memory_space<vmem>>, vector<1x128xf32>
    %4 = vector.broadcast %3 : vector<1x128xf32> to vector<8x128xf32>
    %5 = arith.addf %2, %4 : vector<8x128xf32>
    %c0_5 = arith.constant 0 : index
    %c0_6 = arith.constant 0 : index
    %6 = vector.load %arg4[%c0_5, %c0_6] : memref<8x128xf32, #tpu.memory_space<vmem>>, vector<8x128xf32>
    tpu.vector_store %arg4[%c0_5, %c0_6], %5 {strides = array<i32>} : memref<8x128xf32, #tpu.memory_space<vmem>>, vector<8x128xf32>,
    return
  }
  func.func @transform_0(%arg0: i32) -> (i32, i32) {
    %c0_i32 = arith.constant 0 : i32
    %c0_i32_0 = arith.constant 0 : i32
    return %arg0, %c0_i32 : i32, i32
  }
  func.func @transform_1(%arg0: i32) -> (i32, i32) {
    %c0_i32 = arith.constant 0 : i32
    %c0_i32_0 = arith.constant 0 : i32
    %c0_i32_1 = arith.constant 0 : i32
    return %c0_i32, %c0_i32_0 : i32, i32
  }
  func.func @transform_2(%arg0: i32) -> (i32, i32) {
    %c0_i32 = arith.constant 0 : i32
    %c0_i32_0 = arith.constant 0 : i32
    %c0_i32_1 = arith.constant 0 : i32
    return %c0_i32, %c0_i32_0 : i32, i32
  }
  func.func @transform_3(%arg0: i32) -> (i32, i32) {
    %c0_i32 = arith.constant 0 : i32
    %c0_i32_0 = arith.constant 0 : i32
    return %arg0, %c0_i32 : i32, i32
  }
}

</mosaic_0001>

<bundles_post_ra>
// kernel: fwd.1
= control target key start
LH: loop header
LB: loop body
LE: loop exit
PB: predicated region body
PF: predicated region fallthrough
CT: control target
= control target key end

     0   :  { %8 = vsyncpa [#allocation3], 0  ;;  %s225_s0 = inlined_call_operand.hbm [shape: f32[8,96], index: 0, kind: input, shape index: {}]   ;;  %s226_s1 = inlined_call_operand.hbm [shape: f32[96,128], index: 1, kind: input, shape index: {}]   ;;  %s227_s2 = inlined_call_operand.hbm [shape: f32[1,128], index: 2, kind: input, shape index: {}]   ;;  %s228_s3 = inlined_call_operand.vmem [shape: f32[8,128], index: 3, kind: output, shape index: {}]  }
   0x1   :  { %9 = vsyncpa [#allocation5], 0  ;;  %s25_s14 = sshll.u32 %s226_s1, 4  ;;  %s188_s15 = smov [#allocation4]   ;;  %s26_s14 = int_to_ptr.hbm [resolvable:$true] %s25_s14 }
   0x2   :  { %s27_s16 = sshll.u32 %s188_s15, 4  ;;  %s15_s19 = sshll.u32 %s225_s0, 4  ;;  %s28_s16 = int_to_ptr.vmem [resolvable:$true] %s27_s16  ;;  %s16_s19 = int_to_ptr.hbm [resolvable:$true] %s15_s19 }
   0x3   :  { %s189_s20 = smov 128   ;;  %s190_s21 = smov 8  }
   0x4   :  { %33 = dma.hbm_to_vmem [thread:$0]  %s26_s14, 1536, %s28_s16, [#allocation5], %s189_s20, %s189_s20, %s190_s21  }
   0x5   :  { %s191_s22 = smov [#allocation2]   ;;  %s39_s26 = sshll.u32 %s227_s2, 4  ;;  %s40_s26 = int_to_ptr.hbm [resolvable:$true] %s39_s26 }
   0x6   :  { %s17_s23 = sshll.u32 %s191_s22, 4  ;;  %s192_s1 = smov [#allocation6]   ;;  %s18_s23 = int_to_ptr.vmem [resolvable:$true] %s17_s23 }
   0x7   :  { %20 = dma.hbm_to_vmem [thread:$0]  %s16_s19, 128, %s18_s23, [#allocation3]  }
   0x8   :  { %s41_s27 = sshll.u32 %s192_s1, 4  ;;  %s42_s27 = int_to_ptr.vmem [resolvable:$true] %s41_s27 }
   0x9   :  { %44 = dma.hbm_to_vmem [thread:$0]  %s40_s26, 16, %s42_s27, [#allocation5]  }
   0xa   :  { %184 = dma.done.wait [#allocation3], 128  }
   0xb   :  { %185 = vsyncadd [#allocation3], 4294967168 }
   0xc   :  { %186 = dma.done.wait [#allocation5], 1552  }
   0xd   :  { %187 = vsyncadd [#allocation5], 4294965744  ;;  %v69_v0 = vld [vmem:[#allocation4 + $0x58] sm:$0xff]  ;;  %v68_v1 = vld [vmem:[#allocation4 + $0x50] sm:$0xff]  ;;  %vm74_vm0 = vcmask 785408  }
   0xe   :  { %82 = vmatpush.msra.mxu0 %v69_v0  ;;  %v67_v2 = vld [vmem:[#allocation4 + $0x48] sm:$0xff]  ;;  %v66_v3 = vld [vmem:[#allocation4 + $0x40] sm:$0xff]  ;;  %v65_v4 = vld [vmem:[#allocation4 + $0x38] sm:$0xff] }
   0xf   :  { %v64_v5 = vld [vmem:[#allocation4 + $0x30] sm:$0xff]  ;;  %v63_v6 = vld [vmem:[#allocation4 + $0x28] sm:$0xff]  ;;  %v62_v7 = vld [vmem:[#allocation4 + $0x20] sm:$0xff] }
  0x10   :  { %83 = vmatpush.msra.mxu0 %v68_v1  ;;  %v61_v8 = vld [vmem:[#allocation4 + $0x18] sm:$0xff]  ;;  %v60_v9 = vld [vmem:[#allocation4 + $0x10] sm:$0xff]  ;;  %v59_v10 = vld [vmem:[#allocation4 + $0x8] sm:$0xff] }
  0x11   :  { %v58_v11 = vld [vmem:[#allocation4] sm:$0xff]  ;;  %v57_v12 = vld [vmem:[#allocation2] sm:$0xff] }
  0x12   :  { %84 = vmatpush.msra.mxu0 %v67_v2  ;;  %v111_v13 = vld [vmem:[#allocation6] ss:$0 sm:$0xff] }
  0x14   :  { %85 = vmatpush.msra.mxu0 %v66_v3 }
  0x16   :  { %86 = vmatpush.msra.mxu0 %v65_v4 }
  0x18   :  { %87 = vmatpush.msra.mxu0 %v64_v5 }
  0x1a   :  { %88 = vmatpush.msra.mxu0 %v63_v6 }
  0x1c   :  { %89 = vmatpush.msra.mxu0 %v62_v7 }
  0x1e   :  { %90 = vmatpush.msra.mxu0 %v61_v8 }
  0x20   :  { %91 = vmatpush.msra.mxu0 %v60_v9 }
  0x22   :  { %92 = vmatpush.msra.mxu0 %v59_v10 }
  0x24   :  { %93 = vmatpush.msra.mxu0 %v58_v11 }
  0x25   :  { %105 = vmatmul.msk.f32.vlgmr.msra.gmra.mxu0 %vm74_vm0, %v57_v12 }
  0xa2   :  { %v95_v14 = vpop.f32.mrf.mxu0 }
  0xa3   :  { %v96_v15 = vadd.f32 %v111_v13, %v95_v14 }
  0xa5   :  { %98 = vst [vmem:[%s228_s3] sm:$0xff] %v96_v15 }
  0xa6   :  { %103 = vsyncpa [#allocation3], 1 }
  0xa7   :  { %104 = vsyncpa [#allocation5], 1 }

</bundles_post_ra>
